<compile_context>
chip_gen: v7x
topology: tpu7x:2x2x1
jax: 0.10.0
libtpu: 0.0.40
codegen_flags: <defaults>
</compile_context>

<pallas_src>
import functools

import jax
import jax.numpy as jnp
from jax.experimental import pallas as pl
from jax.experimental.pallas import tpu as pltpu


_EPS_BIAS = 0.001          # the +0.001 inside the reference log
_SMALL_N_FUSED = 128       # single fused kernel at or below this batch size


# --------------------------------------------------------------------------- #
# In-kernel helpers
# --------------------------------------------------------------------------- #
def _lane_fold(x):
    """(R, C) -> (R, 128): add 128-wide lane groups (VALU adds, no XLU)."""
    c = x.shape[-1]
    if c <= 128:
        return x
    acc = x[:, 0:128]
    for s in range(128, c, 128):
        acc = acc + x[:, s:s + 128]
    return acc


def _tile_index_masks(i, j, tm, tn, n_valid):
    """Row/col global indices and validity mask for the current (TM, TN) tile."""
    row_idx = i * tm + jax.lax.broadcasted_iota(jnp.int32, (tm, tn), 0)
    col_idx = j * tn + jax.lax.broadcasted_iota(jnp.int32, (tm, tn), 1)
    valid = (row_idx < n_valid) & (col_idx < n_valid)
    return row_idx, col_idx, valid


# --------------------------------------------------------------------------- #
# Tiled pass A, default labels (positives == diagonal) -> single pass
# --------------------------------------------------------------------------- #
def _pass_a_diag_kernel(v1_ref, v2t_ref, row_ns_ref, diag_e_ref, diag_lg_ref,
                        racc, deacc, dlacc, *, n_valid):
    i = pl.program_id(0)
    j = pl.program_id(1)
    nj = pl.num_programs(1)
    tm = v1_ref.shape[0]
    tn = v2t_ref.shape[1]

    @pl.when(j == 0)
    def _init():
        racc[...] = jnp.zeros_like(racc)
        deacc[...] = jnp.zeros_like(deacc)
        dlacc[...] = jnp.zeros_like(dlacc)

    # exp(t) is already folded into v1; v2 arrives pre-transposed -> NN matmul.
    lg = jnp.dot(v1_ref[...], v2t_ref[...], preferred_element_type=jnp.float32)
    e = jnp.exp(lg)

    row_idx, col_idx, valid = _tile_index_masks(i, j, tm, tn, n_valid)
    pos_b = valid & (row_idx == col_idx)
    neg = jnp.where(valid & jnp.logical_not(pos_b), 1.0, 0.0)

    # Lane-dense accumulation: no per-j cross-lane reduce / narrow store.
    racc[...] += _lane_fold(neg * e)

    # Only tiles intersecting the global diagonal carry positives.
    @pl.when((i * tm < (j + 1) * tn) & (j * tn < (i + 1) * tm))
    def _diag():
        pos = pos_b.astype(jnp.float32)
        deacc[...] += _lane_fold(pos * e)
        dlacc[...] += _lane_fold(pos * lg)

    @pl.when(j == nj - 1)
    def _store():
        row_ns_ref[...] = jnp.sum(racc[...], axis=1, keepdims=True)
        diag_e_ref[...] = jnp.sum(deacc[...], axis=1, keepdims=True)
        diag_lg_ref[...] = jnp.sum(dlacc[...], axis=1, keepdims=True)


# --------------------------------------------------------------------------- #
# Tiled pass A, labeled case: row / column negative exp-sums
# --------------------------------------------------------------------------- #
def _pass_a_labeled_kernel(v1_ref, v2t_ref, labr_ref, labc_ref,
                           row_ns_ref, col_part_ref, racc, *, n_valid):
    i = pl.program_id(0)
    j = pl.program_id(1)
    nj = pl.num_programs(1)
    tm = v1_ref.shape[0]
    tn = v2t_ref.shape[1]

    @pl.when(j == 0)
    def _init():
        racc[...] = jnp.zeros_like(racc)

    lg = jnp.dot(v1_ref[...], v2t_ref[...], preferred_element_type=jnp.float32)
    _, _, valid = _tile_index_masks(i, j, tm, tn, n_valid)
    same = labr_ref[...] == labc_ref[...]               # (TM,1) vs (1,TN) -> (TM,TN)
    neg = jnp.where(valid & jnp.logical_not(same), 1.0, 0.0)
    en = neg * jnp.exp(lg)

    racc[...] += _lane_fold(en)
    # Per-(row_block, col_block) column partial sums; reduced over row blocks
    # outside the kernel (tiny: n_rb * N floats).
    col_part_ref[...] = jnp.sum(en, axis=0, keepdims=True).reshape(col_part_ref.shape)

    @pl.when(j == nj - 1)
    def _store():
        row_ns_ref[...] = jnp.sum(racc[...], axis=1, keepdims=True)


# --------------------------------------------------------------------------- #
# Tiled pass B, labeled case: positive-pair log terms, gated per tile
# --------------------------------------------------------------------------- #
def _pass_b_labeled_kernel(has_pos_ref, v1_ref, v2t_ref, labr_ref, labc_ref,
                           row_ns_ref, col_ns_ref, l1_ref, l2_ref,
                           acc1, acc2, *, n_valid):
    i = pl.program_id(0)
    j = pl.program_id(1)
    nj = pl.num_programs(1)
    tm = v1_ref.shape[0]
    tn = v2t_ref.shape[1]

    @pl.when(j == 0)
    def _init():
        acc1[...] = jnp.zeros_like(acc1)
        acc2[...] = jnp.zeros_like(acc2)

    # Skip all compute (matmul, exp, log) on tiles with no positive pair.
    @pl.when(has_pos_ref[i, j] != 0)
    def _body():
        lg = jnp.dot(v1_ref[...], v2t_ref[...], preferred_element_type=jnp.float32)
        e = jnp.exp(lg)
        _, _, valid = _tile_index_masks(i, j, tm, tn, n_valid)
        same = labr_ref[...] == labc_ref[...]
        pos = jnp.where(valid & same, 1.0, 0.0)
        # loss2 uses columns of logits == rows of logits.T: same tile, same
        # exp(logits), just the column negative sums instead of the row ones.
        t1 = pos * (jnp.log(e + row_ns_ref[...] + _EPS_BIAS) - lg)
        t2 = pos * (jnp.log(e + col_ns_ref[...] + _EPS_BIAS) - lg)
        acc1[...] += _lane_fold(t1)
        acc2[...] += _lane_fold(t2)

    @pl.when(j == nj - 1)
    def _store():
        l1_ref[...] = jnp.sum(acc1[...], axis=0, keepdims=True).reshape(l1_ref.shape)
        l2_ref[...] = jnp.sum(acc2[...], axis=0, keepdims=True).reshape(l2_ref.shape)


# --------------------------------------------------------------------------- #
# Fused small-N kernel (single tile, one launch)
# --------------------------------------------------------------------------- #
def _fused_small_kernel(v1_ref, v2t_ref, labr_ref, labc_ref, *out_refs,
                        n_valid, compute_loss2):
    p = v1_ref.shape[0]
    lg = jnp.dot(v1_ref[...], v2t_ref[...], preferred_element_type=jnp.float32)
    e = jnp.exp(lg)
    row_idx = jax.lax.broadcasted_iota(jnp.int32, (p, p), 0)
    col_idx = jax.lax.broadcasted_iota(jnp.int32, (p, p), 1)
    valid = (row_idx < n_valid) & (col_idx < n_valid)
    same = labr_ref[...] == labc_ref[...]
    pos = jnp.where(valid & same, 1.0, 0.0)
    neg = jnp.where(valid & jnp.logical_not(same), 1.0, 0.0)
    en = neg * e

    row_ns = jnp.sum(en, axis=1, keepdims=True)           # (P, 1)
    t1 = pos * (jnp.log(e + row_ns + _EPS_BIAS) - lg)
    out_refs[0][...] = jnp.sum(t1, axis=1, keepdims=True)

    if compute_loss2:                                      # static specialization
        col_ns = jnp.sum(en, axis=0, keepdims=True)        # (1, P)
        t2 = pos * (jnp.log(e + col_ns + _EPS_BIAS) - lg)
        out_refs[1][...] = jnp.sum(t2, axis=1, keepdims=True)


# --------------------------------------------------------------------------- #
# Wrapper
# --------------------------------------------------------------------------- #
def _round_up(x, m):
    return ((x + m - 1) // m) * m


def _pick_tiles(n, d):
    """Tile sizes (TM, TN) and padded N for the tiled path (n > 128)."""
    if n <= 512:
        # TM = 128 keeps >= 2 row blocks so both v7x TensorCores get work on
        # the "parallel" axis; TN = 128 keeps padding waste low.
        return 128, 128, _round_up(n, 128)
    tn = 256
    if d * tn * 4 > (4 << 20):            # keep the (D, TN) v2 block <= 4 MiB
        tn = 128
    n_pad = _round_up(n, tn)
    tm = tn
    if tm * d * 4 > (2 << 20):
        tm = 128
    # Grow TM (v1 block is resident across j, so bigger TM cuts v2 HBM
    # re-read traffic) while it divides n_pad, keeps >= 2 row blocks and the
    # (TM, D) v1 block stays <= 2 MiB.
    while (tm * 2 <= 512 and n_pad % (tm * 2) == 0 and n_pad // (tm * 2) >= 2
           and (tm * 2) * d * 4 <= (2 << 20)):
        tm *= 2
    return tm, tn, n_pad


def _pad_rows(x, n_pad, value=0.0):
    if x.shape[0] == n_pad:
        return x
    pad = jnp.full((n_pad - x.shape[0],) + x.shape[1:], value, x.dtype)
    return jnp.concatenate([x, pad], axis=0)


def _small_path(v1n, v2n, labels, n, d, compute_loss2):
    p = max(8, _round_up(n, 8))
    v1p = _pad_rows(v1n, p)
    v2tp = _pad_rows(v2n, p).T                     # (D, P): plain NN matmul
    labp = _pad_rows(labels, p, value=-1)
    labr = labp.reshape(p, 1)
    labc = labp.reshape(1, p)

    vmem = pl.BlockSpec(memory_space=pltpu.MemorySpace.VMEM)
    n_out = 2 if compute_loss2 else 1
    outs = pl.pallas_call(
        functools.partial(_fused_small_kernel, n_valid=n,
                          compute_loss2=compute_loss2),
        in_specs=[vmem, vmem, vmem, vmem],
        out_specs=tuple(pl.BlockSpec(memory_space=pltpu.MemorySpace.VMEM)
                        for _ in range(n_out)),
        out_shape=tuple(jax.ShapeDtypeStruct((p, 1), jnp.float32)
                        for _ in range(n_out)),
    )(v1p, v2tp, labr, labc)

    loss1 = jnp.sum(outs[0]) / n
    loss2 = jnp.sum(outs[1]) / n if compute_loss2 else 0.0
    return (loss1 + loss2) / 2.0


def _tiled_path(v1n, v2n, labels, n, d, compute_loss2):
    tm, tn, n_pad = _pick_tiles(n, d)
    n_rb = n_pad // tm
    n_cb = n_pad // tn

    v1p = _pad_rows(v1n, n_pad)                    # (N_pad, D), exp(t) folded in
    v2tp = _pad_rows(v2n, n_pad).T                 # (D, N_pad)

    v1_spec = pl.BlockSpec((tm, d), lambda i, j: (i, 0))
    v2t_spec = pl.BlockSpec((d, tn), lambda i, j: (0, j))
    rowvec_spec = pl.BlockSpec((tm, 1), lambda i, j: (i, 0))
    colvec_spec = pl.BlockSpec((1, tn), lambda i, j: (0, j))

    cparams = pltpu.CompilerParams(
        dimension_semantics=("parallel", "arbitrary"),
        # Explicit limit: comfortably covers the double-buffered blocks even
        # for large D, and fits v7x (64 MiB physical) / raises v5e's default.
        vmem_limit_bytes=32 * 1024 * 1024,
    )

    if not compute_loss2:
        # Single pass: positives == diagonal, so emit per-row neg-exp sum and
        # the diagonal (exp, logit); an O(N) JAX epilogue finishes loss1.
        row_ns, diag_e, diag_lg = pl.pallas_call(
            functools.partial(_pass_a_diag_kernel, n_valid=n),
            grid=(n_rb, n_cb),
            in_specs=[v1_spec, v2t_spec],
            out_specs=(rowvec_spec, rowvec_spec, rowvec_spec),
            out_shape=tuple(jax.ShapeDtypeStruct((n_pad, 1), jnp.float32)
                            for _ in range(3)),
            scratch_shapes=[pltpu.VMEM((tm, 128), jnp.float32) for _ in range(3)],
            compiler_params=cparams,
        )(v1p, v2tp)

        row_valid = (jnp.arange(n_pad, dtype=jnp.int32) < n)[:, None]
        terms = jnp.where(row_valid,
                          jnp.log(diag_e + row_ns + _EPS_BIAS) - diag_lg, 0.0)
        loss1 = jnp.sum(terms) / n
        return loss1 / 2.0                          # loss2 == 0 when no labels

    labp = _pad_rows(labels, n_pad, value=-1)
    labr = labp.reshape(n_pad, 1)
    labc = labp.reshape(1, n_pad)

    # ---- pass A: row / column negative exp-sums ----------------------------
    row_ns, col_parts = pl.pallas_call(
        functools.partial(_pass_a_labeled_kernel, n_valid=n),
        grid=(n_rb, n_cb),
        in_specs=[v1_spec, v2t_spec, rowvec_spec, colvec_spec],
        out_specs=(rowvec_spec,
                   pl.BlockSpec((1, 1, tn), lambda i, j: (i, 0, j))),
        out_shape=(jax.ShapeDtypeStruct((n_pad, 1), jnp.float32),
                   jax.ShapeDtypeStruct((n_rb, 1, n_pad), jnp.float32)),
        scratch_shapes=[pltpu.VMEM((tm, 128), jnp.float32)],
        compiler_params=cparams,
    )(v1p, v2tp, labr, labc)

    col_ns = jnp.sum(col_parts, axis=0)             # (1, N_pad) glue reduce

    # Block-sparsity mask: which tiles contain any (same-label, valid) pair.
    # XLA fuses the compare into this tiny (n_rb, n_cb) reduction.
    validv = jnp.arange(n_pad) < n
    eq = (labp[:, None] == labp[None, :]) & validv[:, None] & validv[None, :]
    has_pos = eq.reshape(n_rb, tm, n_cb, tn).any(axis=(1, 3)).astype(jnp.int32)

    smem_spec = pl.BlockSpec(memory_space=pltpu.MemorySpace.SMEM)
    part_spec = pl.BlockSpec((1, 1, 128), lambda i, j: (i, 0, 0))

    # ---- pass B: positive-pair log terms (tile-gated) -----------------------
    l1_parts, l2_parts = pl.pallas_call(
        functools.partial(_pass_b_labeled_kernel, n_valid=n),
        grid=(n_rb, n_cb),
        in_specs=[smem_spec, v1_spec, v2t_spec, rowvec_spec, colvec_spec,
                  rowvec_spec, colvec_spec],
        out_specs=(part_spec, part_spec),
        out_shape=tuple(jax.ShapeDtypeStruct((n_rb, 1, 128), jnp.float32)
                        for _ in range(2)),
        scratch_shapes=[pltpu.VMEM((tm, 128), jnp.float32) for _ in range(2)],
        compiler_params=cparams,
    )(has_pos, v1p, v2tp, labr, labc, row_ns, col_ns)

    loss1 = jnp.sum(l1_parts) / n
    loss2 = jnp.sum(l2_parts) / n
    return (loss1 + loss2) / 2.0


def clip_loss_pallas(vectors1, vectors2, t, v1_labels=None):
    """Forward pass of ClipLoss; t is the (scalar) learnable temperature."""
    n, d = vectors1.shape
    compute_loss2 = v1_labels is not None

    # O(N*D) prep in plain JAX: normalize once (exactly as the reference, no
    # epsilon), fold exp(t) into v1, keep v2 transposed for an NN matmul.
    t_scalar = jnp.asarray(t, jnp.float32).reshape(())
    v1f = vectors1.astype(jnp.float32)
    v2f = vectors2.astype(jnp.float32)
    v1n = (v1f / jnp.linalg.norm(v1f, axis=-1, keepdims=True)) * jnp.exp(t_scalar)
    v2n = v2f / jnp.linalg.norm(v2f, axis=-1, keepdims=True)

    labels = (jnp.arange(n, dtype=jnp.int32) if v1_labels is None
              else jnp.asarray(v1_labels, jnp.int32))

    if n <= _SMALL_N_FUSED:
        return _small_path(v1n, v2n, labels, n, d, compute_loss2)
    return _tiled_path(v1n, v2n, labels, n, d, compute_loss2)


# --------------------------------------------------------------------------- #
# Pure-JAX reference (mirrors the PyTorch module semantics)
# --------------------------------------------------------------------------- #
def clip_loss_ref(vectors1, vectors2, t, v1_labels=None):
    v1 = vectors1 / jnp.linalg.norm(vectors1, axis=-1, keepdims=True)
    v2 = vectors2 / jnp.linalg.norm(vectors2, axis=-1, keepdims=True)
    logits = (v1 @ v2.T) * jnp.exp(jnp.asarray(t, jnp.float32).reshape(()))
    n = logits.shape[0]
    labels = jnp.arange(n) if v1_labels is None else v1_labels
    rel = (labels[:, None] == labels[None, :]).astype(jnp.float32)

    def llh(lg):
        e = jnp.exp(lg)
        neg = jnp.sum((1.0 - rel) * e, axis=-1, keepdims=True)
        return jnp.sum(rel * (jnp.log(e + neg + _EPS_BIAS) - lg)) / n

    loss1 = llh(logits)
    loss2 = llh(logits.T) if v1_labels is not None else 0.0
    return (loss1 + loss2) / 2.0


if __name__ == "__main__":
    key = jax.random.PRNGKey(0)
    k1, k2, k3, k4 = jax.random.split(key, 4)

    # Small fused path (typical module usage): batch=8, feature=32.
    N, D = 8, 32
    v1 = jax.random.normal(k1, (N, D), dtype=jnp.float32)
    v2 = jax.random.normal(k2, (N, D), dtype=jnp.float32)
    t = jnp.float32(0.0)   # nn.Parameter(torch.Tensor([0.0]))

    out = jax.block_until_ready(clip_loss_pallas(v1, v2, t))
    ref = clip_loss_ref(v1, v2, t)
    assert jnp.allclose(out, ref, rtol=1e-5, atol=1e-5), (out, ref)

    labels = jnp.array([0, 0, 1, 1, 2, 2, 3, 3], dtype=jnp.int32)
    out_l = jax.block_until_ready(clip_loss_pallas(v1, v2, t, v1_labels=labels))
    ref_l = clip_loss_ref(v1, v2, t, v1_labels=labels)
    assert jnp.allclose(out_l, ref_l, rtol=1e-5, atol=1e-5), (out_l, ref_l)

    # Tiled multi-block path (N=200 -> padded to 256, 2x2 grid of 128x128 tiles).
    N2, D2 = 200, 32
    v1b = jax.random.normal(k3, (N2, D2), dtype=jnp.float32)
    v2b = jax.random.normal(k4, (N2, D2), dtype=jnp.float32)
    t_b = jnp.float32(0.5)

    out_b = jax.block_until_ready(clip_loss_pallas(v1b, v2b, t_b))   # 1-pass path
    ref_b = clip_loss_ref(v1b, v2b, t_b)
    assert jnp.allclose(out_b, ref_b, rtol=1e-4, atol=1e-4), (out_b, ref_b)

    labels_b = jnp.arange(N2, dtype=jnp.int32) % 7                   # 2-pass path
    out_bl = jax.block_until_ready(
        clip_loss_pallas(v1b, v2b, t_b, v1_labels=labels_b))
    ref_bl = clip_loss_ref(v1b, v2b, t_b, v1_labels=labels_b)
    assert jnp.allclose(out_bl, ref_bl, rtol=1e-4, atol=1e-4), (out_bl, ref_bl)

    print("KERNEL_OK")
</pallas_src>

<mosaic_0001>
module attributes {stable_mosaic.version = 11 : i64} {
  func.func @_fused_small_kernel(%arg0: memref<8x32xf32, #tpu.memory_space<vmem>>, %arg1: memref<32x8xf32, #tpu.memory_space<vmem>>, %arg2: memref<8x1xi32, #tpu.memory_space<vmem>>, %arg3: memref<1x8xi32, #tpu.memory_space<vmem>>, %arg4: memref<8x1xf32, #tpu.memory_space<vmem>>) attributes {dimension_semantics = [], scalar_prefetch = 0 : i64, scratch_operands = 0 : i64, tpu.core_type = #tpu.core_type<tc>} {
    %c0 = arith.constant 0 : index
    %c0_0 = arith.constant 0 : index
    %0 = vector.load %arg0[%c0, %c0_0] : memref<8x32xf32, #tpu.memory_space<vmem>>, vector<8x32xf32>
    %c0_1 = arith.constant 0 : index
    %c0_2 = arith.constant 0 : index
    %1 = vector.load %arg1[%c0_1, %c0_2] : memref<32x8xf32, #tpu.memory_space<vmem>>, vector<32x8xf32>
    %cst = arith.constant dense<0.000000e+00> : vector<8x8xf32>
    %2 = tpu.matmul %0, %1, %cst {dimension_numbers = #tpu.dot_dimension_numbers<[1], [0], [0], [1], [0, 0, 1, 1], [], []>} : vector<8x32xf32>, vector<32x8xf32>, vector<8x8xf32> -> vector<8x8xf32>
    %3 = math.exp %2 : vector<8x8xf32>
    %4 = tpu.iota {dimensions = array<i32: 0>} : vector<8x8xi32>
    %5 = tpu.iota {dimensions = array<i32: 1>} : vector<8x8xi32>
    %c8_i32 = arith.constant 8 : i32
    %6 = vector.broadcast %c8_i32 : i32 to vector<8x8xi32>
    %7 = arith.cmpi slt, %4, %6 : vector<8x8xi32>
    %c8_i32_3 = arith.constant 8 : i32
    %8 = vector.broadcast %c8_i32_3 : i32 to vector<8x8xi32>
    %9 = arith.cmpi slt, %5, %8 : vector<8x8xi32>
    %10 = arith.andi %7, %9 : vector<8x8xi1>
    %c0_4 = arith.constant 0 : index
    %c0_5 = arith.constant 0 : index
    %11 = vector.load %arg2[%c0_4, %c0_5] : memref<8x1xi32, #tpu.memory_space<vmem>>, vector<8x1xi32>
    %c0_6 = arith.constant 0 : index
    %c0_7 = arith.constant 0 : index
    %12 = vector.load %arg3[%c0_6, %c0_7] : memref<1x8xi32, #tpu.memory_space<vmem>>, vector<1x8xi32>
    %13 = vector.broadcast %11 : vector<8x1xi32> to vector<8x8xi32>
    %14 = vector.broadcast %12 : vector<1x8xi32> to vector<8x8xi32>
    %15 = arith.cmpi eq, %13, %14 : vector<8x8xi32>
    %16 = arith.andi %10, %15 : vector<8x8xi1>
    %cst_8 = arith.constant 1.000000e+00 : f32
    %cst_9 = arith.constant 0.000000e+00 : f32
    %17 = vector.broadcast %cst_8 : f32 to vector<8x8xf32>
    %18 = vector.broadcast %cst_9 : f32 to vector<8x8xf32>
    %19 = arith.select %16, %17, %18 : vector<8x8xi1>, vector<8x8xf32>
    %cst_10 = arith.constant dense<true> : vector<8x8xi1>
    %20 = arith.xori %15, %cst_10 : vector<8x8xi1>
    %21 = arith.andi %10, %20 : vector<8x8xi1>
    %cst_11 = arith.constant 1.000000e+00 : f32
    %cst_12 = arith.constant 0.000000e+00 : f32
    %22 = vector.broadcast %cst_11 : f32 to vector<8x8xf32>
    %23 = vector.broadcast %cst_12 : f32 to vector<8x8xf32>
    %24 = arith.select %21, %22, %23 : vector<8x8xi1>, vector<8x8xf32>
    %25 = arith.mulf %24, %3 : vector<8x8xf32>
    %cst_13 = arith.constant dense<0.000000e+00> : vector<8xf32>
    %26 = vector.multi_reduction <add>, %25, %cst_13 [1] : vector<8x8xf32> to vector<8xf32>
    %27 = vector.shape_cast %26 : vector<8xf32> to vector<8x1xf32>
    %28 = vector.broadcast %27 : vector<8x1xf32> to vector<8x8xf32>
    %29 = arith.addf %3, %28 : vector<8x8xf32>
    %cst_14 = arith.constant 1.000000e-03 : f32
    %30 = vector.broadcast %cst_14 : f32 to vector<8x8xf32>
    %31 = arith.addf %29, %30 : vector<8x8xf32>
    %32 = math.log %31 : vector<8x8xf32>
    %33 = arith.subf %32, %2 : vector<8x8xf32>
    %34 = arith.mulf %19, %33 : vector<8x8xf32>
    %cst_15 = arith.constant dense<0.000000e+00> : vector<8xf32>
    %35 = vector.multi_reduction <add>, %34, %cst_15 [1] : vector<8x8xf32> to vector<8xf32>
    %36 = vector.shape_cast %35 : vector<8xf32> to vector<8x1xf32>
    %c0_16 = arith.constant 0 : index
    %c0_17 = arith.constant 0 : index
    %37 = vector.load %arg4[%c0_16, %c0_17] : memref<8x1xf32, #tpu.memory_space<vmem>>, vector<8x1xf32>
    tpu.vector_store %arg4[%c0_16, %c0_17], %36 {strides = array<i32>} : memref<8x1xf32, #tpu.memory_space<vmem>>, vector<8x1xf32>,
    return
  }
}

</mosaic_0001>

<bundles_post_ra>
// kernel: tpu_custom_call.1
= control target key start
LH: loop header
LB: loop body
LE: loop exit
PB: predicated region body
PF: predicated region fallthrough
CT: control target
= control target key end

     0   :  { %v174_v0 = vmov 0.0|0.0   ;;  %vm175_vm0 = vmmov 0   ;;  %v176_v4 = vmov 0.0   ;;  %v177_v7 = vmov 0   ;;  %s234_s1 = inlined_call_operand.vmem [shape: f32[32,8], index: 1, kind: input, shape index: {}]   ;;  %s235_s2 = inlined_call_operand.vmem [shape: s32[8,1], index: 2, kind: input, shape index: {}]   ;;  %s236_s0 = inlined_call_operand.vmem [shape: f32[8,32], index: 0, kind: input, shape index: {}]   ;;  %s237_s3 = inlined_call_operand.vmem [shape: s32[1,8], index: 3, kind: input, shape index: {}]   ;;  %s238_s4 = inlined_call_operand.vmem [shape: f32[8,1], index: 4, kind: output, shape index: {}]  }
   0x1   :  { %158 = vmatprep.subr.bf16.mxu0 %v174_v0  ;;  %v18_v1 = vld [vmem:[%s234_s1] sm:$0xff]  ;;  %v19_v2 = vld [vmem:[%s234_s1 + $0x8] sm:$0xff]  ;;  %v20_v3 = vld [vmem:[%s234_s1 + $0x10] sm:$0xff]  ;;  %155 = vmatprep.mubr.msk.f32.mxu0 %vm175_vm0, %v176_v4  ;;  %vm22_vm1 = vcmask 261120   ;;  %v100_v11 = vlaneseq  ;;  %vm178_vm5 = vmmov 1   ;;  %vm121_vm8 = vcmask 64512  }
   0x2   :  { %v159_v5 = vpack.c.bf16 %v19_v2, %v18_v1  ;;  %v21_v6 = vld [vmem:[%s234_s1 + $0x18] sm:$0xff]  ;;  %169 = vset.pattern.permute.xlu0 %v177_v7  ;;  %v105_v8 = vld [vmem:[%s235_s2] sm:$0xff]  ;;  %vm134_vm9 = vcmask 7168  }
   0x3   :  { %108 = vperm.xlu0 %169, %v105_v8   ;;  %v162_v9 = vpack.c.bf16 %v21_v6, %v20_v3  ;;  %v17_v10 = vld [vmem:[%s236_s0] sm:$0xff]  ;;  %v101_v12 = vand.u32 127, %v100_v11 }
   0x4   :  { %160 = vmatpush3.bf16.msra.mxu0 %v159_v5  ;;  %v141_v13 = vld [vmem:[%s237_s3] ss:$0 sm:$0xff] }
   0x5   :  { %161 = vmatprep.subr.bf16.mxu0 %v174_v0  ;;  %vm103_vm2 = vcmp.lt.s32.totalorder %v101_v12, 8 }
   0x8   :  { %163 = vmatpush3.bf16.msra.mxu0 %v162_v9 }
   0xb   :  { %156 = vmatmul.mubr.msk.f32.vlgmr.msra.gmra.mrb[0].mxu0 %vm22_vm1, %v17_v10 }
  0x82   :  { %v109_v14 = vpop.permute.xlu0 %108 }
  0x83   :  { %vm114_vm3 = vcmp.eq.s32.totalorder %v109_v14, %v141_v13 }
  0x84   :  { %vm225_vm4 = vmand %vm103_vm2, %vm114_vm3 }
  0x85   :  { %vm117_vm6 = vmxor %vm114_vm3, %vm178_vm5  ;;  %v116_v29 = vsel %vm225_vm4, 1.0, %v176_v4 }
  0x86   :  { %vm118_vm7 = vmand %vm103_vm2, %vm117_vm6 }
  0x87   :  { %v119_v19 = vsel %vm118_vm7, 1.0, %v176_v4 }
  0xde   :  { %v92_v16 = vpop.f32.mrb[0].mxu0 }
  0xdf   :  { %v96_v17 = vmul.f32 1.442695, %v92_v16  ;;  %v157_v18 = vpop.f32.mrb[1].mxu0 }
  0xe1   :  { %170 = vpow2.f32 %v96_v17 }
  0xeb   :  { %v171_v20 = vpop.eup %170 }
  0xec   :  { %v120_v21 = vmul.f32 %v171_v20, %v119_v19 }
  0xee   :  { %v122_v22 = vsel %vm121_vm8, %v120_v21, 0.0 }
  0xef   :  { %123 = vadd.xlane.f32.xlu0 %v122_v22 }
 0x17c   :  { %v124_v23 = vpop.xlane.xlu0 %123 }
 0x17d   :  { %v125_v24 = vadd.f32 %v171_v20, %v124_v23 }
 0x17f   :  { %v126_v25 = vadd.f32 0.001, %v125_v24 }
 0x181   :  { %172 = vlog2.f32 %v126_v25 }
 0x18b   :  { %v173_v26 = vpop.eup %172 }
 0x18c   :  { %v128_v27 = vmul.f32 0.6931472, %v173_v26 }
 0x18e   :  { %v129_v28 = vsub.f32 %v128_v27, %v92_v16 }
 0x190   :  { %v130_v30 = vmul.f32 %v129_v28, %v116_v29 }
 0x192   :  { %v131_v31 = vsel %vm121_vm8, %v130_v30, 0.0 }
 0x193   :  { %132 = vadd.xlane.f32.xlu1 %v131_v31 }
 0x220   :  { %v133_v32 = vpop.xlane.xlu1 %132 }
 0x221   :  { %135 = vst.msk [vmem:[%s238_s4] sm:$0xff] %vm134_vm9, %v133_v32 }

</bundles_post_ra>
